<compile_context>
chip_gen: v6e
topology: v6e:2x2x1
jax: 0.10.0
libtpu: 0.0.40
codegen_flags: <defaults>
</compile_context>

<pallas_src>
import jax
import jax.numpy as jnp
from jax import lax
from jax.experimental import pallas as pl
from jax.experimental.pallas import tpu as pltpu

DECAY = 0.999
IN_F = 32
OUT_F = 32
BATCH = 8
LANES = 128
SUBLANES = 8
# (MAX_BLOCK_ROWS, 128) f32 block = 2 MiB.  3 refs (avg, p, out) x 2 pipeline
# buffers = 12 MiB of VMEM -- comfortably under the 32 MiB scoped-VMEM default
# on v5e/v6e and, importantly, also on v7x (only 64 MiB physical VMEM there).
# Big blocks keep the mem-bound elementwise update near HBM roofline
# (~85% vs ~29% for minimum-size (8,128) tiles).
MAX_BLOCK_ROWS = 4096


# --------------------------- forward kernel ---------------------------------
def _linear_kernel(x_ref, w_ref, b_ref, o_ref):
    # x: (B, IN_F), w: (OUT_F, IN_F) [PyTorch layout], b: (1, OUT_F)
    # Contract x's dim 1 with w's dim 1 directly -- avoids the per-call XLU
    # transpose that `w.T` would insert in front of the MXU.
    y = lax.dot_general(
        x_ref[...],
        w_ref[...],
        dimension_numbers=(((1,), (1,)), ((), ())),
        preferred_element_type=jnp.float32,
    )
    o_ref[...] = (y + b_ref[...]).astype(o_ref.dtype)


def ema_forward(params, x):
    """Equivalent of ExponentialMovingAverage.forward -> self.module(x)."""
    # NOTE: OUT_F=32 (<128 lanes) and B=8 are toy sizes; at scale, pad OUT_F
    # to a multiple of 128 and batch >=128 rows for lane-dense stores and
    # reasonable MXU utilization.  Semantics of the wrapped Linear are kept.
    w, b = params["weight"], params["bias"]
    B = x.shape[0]
    return pl.pallas_call(
        _linear_kernel,
        out_shape=jax.ShapeDtypeStruct((B, OUT_F), x.dtype),
        grid=(1,),
        in_specs=[
            pl.BlockSpec((B, IN_F), lambda i: (0, 0)),
            pl.BlockSpec((OUT_F, IN_F), lambda i: (0, 0)),
            pl.BlockSpec((1, OUT_F), lambda i: (0, 0)),
        ],
        out_specs=pl.BlockSpec((B, OUT_F), lambda i: (0, 0)),
    )(x, w, b.reshape(1, OUT_F))


# --------------------------- EMA update kernel -------------------------------
def _ema_kernel(n_ref, avg_ref, p_ref, out_ref):
    # n_ref: scalar-prefetched n_averaged (SMEM).  Replicates:
    #   if n_averaged == 0: avg.copy_(p)
    #   else:               avg.mul_(decay).add_(p, alpha=1-decay)
    # The branch is resolved once per block on the SMEM scalar (pl.when) --
    # no full-tile select, no lerp work on the first update, and any NaN/Inf
    # in avg never touches the vector path of the copy branch.
    @pl.when(n_ref[0] == 0)
    def _():
        out_ref[...] = p_ref[...]

    @pl.when(n_ref[0] != 0)
    def _():
        # Blend in f32 regardless of storage dtype (safe for bf16 params,
        # and v5e's VPU has no native bf16 path anyway).
        avg = avg_ref[...].astype(jnp.float32)
        p = p_ref[...].astype(jnp.float32)
        out_ref[...] = (avg * DECAY + p * (1.0 - DECAY)).astype(out_ref.dtype)


def _ema_update_leaf(avg, mod, n_arr):
    """EMA-update a single parameter/buffer leaf with one pallas_call."""
    shape, dtype, size = avg.shape, avg.dtype, avg.size
    flat_a = avg.reshape(-1)
    flat_m = mod.reshape(-1).astype(dtype)

    # View the leaf as (rows, 128): lane-dense, unmasked vector stores.
    rows = -(-size // LANES)
    rows = ((rows + SUBLANES - 1) // SUBLANES) * SUBLANES
    if rows <= MAX_BLOCK_ROWS:
        block_rows = rows                      # single large block, grid=(1,)
    else:
        block_rows = MAX_BLOCK_ROWS            # 2 MiB blocks for big leaves
        rows = ((rows + block_rows - 1) // block_rows) * block_rows

    pad = rows * LANES - size
    if pad:
        flat_a = jnp.pad(flat_a, (0, pad))
        flat_m = jnp.pad(flat_m, (0, pad))
    a2 = flat_a.reshape(rows, LANES)
    m2 = flat_m.reshape(rows, LANES)

    out2 = pl.pallas_call(
        _ema_kernel,
        out_shape=jax.ShapeDtypeStruct((rows, LANES), dtype),
        grid_spec=pltpu.PrefetchScalarGridSpec(
            num_scalar_prefetch=1,
            grid=(rows // block_rows,),
            in_specs=[
                pl.BlockSpec((block_rows, LANES), lambda i, n: (i, 0)),
                pl.BlockSpec((block_rows, LANES), lambda i, n: (i, 0)),
            ],
            out_specs=pl.BlockSpec((block_rows, LANES), lambda i, n: (i, 0)),
        ),
        # EMA is semantically in place (PyTorch mul_/add_): alias avg
        # (operand 1 -- index 0 is the scalar-prefetch arg) to the output,
        # removing a full output HBM allocation + write-allocate.
        input_output_aliases={1: 0},
        compiler_params=pltpu.CompilerParams(
            # Neutral on v5e/v6e (1 TC); lets v7x shard blocks across 2 TCs.
            dimension_semantics=("parallel",),
        ),
    )(n_arr, a2, m2)

    new_leaf = out2.reshape(-1)
    if pad:
        new_leaf = new_leaf[:size]
    return new_leaf.reshape(shape)


def ema_update_parameters(avg_params, model_params, n_averaged):
    """Equivalent of ExponentialMovingAverage.update_parameters.

    One kernel launch per parameter leaf -- no whole-model concat/pad/slice
    round trip through XLA, so each parameter byte is read/written once.
    """
    n_arr = jnp.asarray(n_averaged, jnp.int32).reshape(1)
    leaves_avg, treedef = jax.tree_util.tree_flatten(avg_params)
    leaves_mod = treedef.flatten_up_to(model_params)
    new_leaves = [
        _ema_update_leaf(a, m, n_arr) for a, m in zip(leaves_avg, leaves_mod)
    ]
    new_avg = jax.tree_util.tree_unflatten(treedef, new_leaves)
    # TODO(synk): PyTorch tracks n_averaged as int64; int32 here (fine below 2**31 updates).
    return new_avg, n_averaged + 1


# ------------------------------- main ----------------------------------------
if __name__ == "__main__":
    key = jax.random.PRNGKey(0)
    k_w, k_b, k_w2, k_b2, k_x = jax.random.split(key, 5)

    # "model" params (the live model being averaged) -- deterministic init.
    model_params = {
        "weight": jax.random.normal(k_w, (OUT_F, IN_F), jnp.float32) * 0.1,
        "bias": jax.random.normal(k_b, (OUT_F,), jnp.float32) * 0.1,
    }
    # EMA module starts as a deepcopy of the model (n_averaged = 0).
    # Explicit copy (deepcopy semantics) also keeps the in-place-aliased EMA
    # buffers disjoint from the live model's buffers.
    avg_params = jax.tree_util.tree_map(jnp.array, model_params)
    n_averaged = jnp.asarray(0, jnp.int32)

    # First update: n_averaged == 0 -> pure copy branch.
    avg_params, n_averaged = ema_update_parameters(avg_params, model_params, n_averaged)

    # Simulate a training step changing the live model, then EMA-blend.
    model_params2 = {
        "weight": model_params["weight"]
        + jax.random.normal(k_w2, (OUT_F, IN_F), jnp.float32) * 0.05,
        "bias": model_params["bias"]
        + jax.random.normal(k_b2, (OUT_F,), jnp.float32) * 0.05,
    }
    avg_params, n_averaged = ema_update_parameters(avg_params, model_params2, n_averaged)

    # Forward pass through the averaged module.
    x = jax.random.normal(k_x, (BATCH, IN_F), jnp.float32)
    y = ema_forward(avg_params, x)
    jax.block_until_ready(y)

    # Pure-JAX reference check.
    ref_w = DECAY * model_params["weight"] + (1.0 - DECAY) * model_params2["weight"]
    ref_b = DECAY * model_params["bias"] + (1.0 - DECAY) * model_params2["bias"]
    ref_y = x @ ref_w.T + ref_b
    assert jnp.allclose(avg_params["weight"], ref_w, atol=1e-6)
    assert jnp.allclose(avg_params["bias"], ref_b, atol=1e-6)
    assert jnp.allclose(y, ref_y, atol=1e-5)
    assert int(n_averaged) == 2

    print("KERNEL_OK")
</pallas_src>

<mosaic_0001>
module attributes {stable_mosaic.version = 11 : i64} {
  func.func @_ema_kernel(%arg0: i32, %arg1: memref<1xi32, #tpu.memory_space<smem>>, %arg2: memref<8x128xf32, #tpu.memory_space<vmem>>, %arg3: memref<8x128xf32, #tpu.memory_space<vmem>>, %arg4: memref<8x128xf32, #tpu.memory_space<vmem>>) attributes {dimension_semantics = [#tpu.dimension_semantics<parallel>], iteration_bounds = array<i64: 1>, scalar_prefetch = 1 : i64, scratch_operands = 0 : i64, tpu.core_type = #tpu.core_type<tc>, window_params = [{transform_indices = @transform_0, window_bounds = array<i64: 8, 128>}, {transform_indices = @transform_1, window_bounds = array<i64: 8, 128>}, {transform_indices = @transform_2, window_bounds = array<i64: 8, 128>}]} {
    %c0 = arith.constant 0 : index
    %0 = memref.load %arg1[%c0] : memref<1xi32, #tpu.memory_space<smem>>
    %c0_i32 = arith.constant 0 : i32
    %1 = arith.cmpi eq, %0, %c0_i32 : i32
    %2 = arith.extui %1 : i1 to i32
    %c0_i32_0 = arith.constant 0 : i32
    %3 = arith.cmpi ne, %2, %c0_i32_0 : i32
    scf.if %3 {
      %c0_4 = arith.constant 0 : index
      %c0_5 = arith.constant 0 : index
      %8 = vector.load %arg3[%c0_4, %c0_5] : memref<8x128xf32, #tpu.memory_space<vmem>>, vector<8x128xf32>
      %c0_6 = arith.constant 0 : index
      %c0_7 = arith.constant 0 : index
      %9 = vector.load %arg4[%c0_6, %c0_7] : memref<8x128xf32, #tpu.memory_space<vmem>>, vector<8x128xf32>
      tpu.vector_store %arg4[%c0_6, %c0_7], %8 {strides = array<i32>} : memref<8x128xf32, #tpu.memory_space<vmem>>, vector<8x128xf32>,
    } else {
    }
    %c0_1 = arith.constant 0 : index
    %4 = memref.load %arg1[%c0_1] : memref<1xi32, #tpu.memory_space<smem>>
    %c0_i32_2 = arith.constant 0 : i32
    %5 = arith.cmpi ne, %4, %c0_i32_2 : i32
    %6 = arith.extui %5 : i1 to i32
    %c0_i32_3 = arith.constant 0 : i32
    %7 = arith.cmpi ne, %6, %c0_i32_3 : i32
    scf.if %7 {
      %c0_4 = arith.constant 0 : index
      %c0_5 = arith.constant 0 : index
      %8 = vector.load %arg2[%c0_4, %c0_5] : memref<8x128xf32, #tpu.memory_space<vmem>>, vector<8x128xf32>
      %c0_6 = arith.constant 0 : index
      %c0_7 = arith.constant 0 : index
      %9 = vector.load %arg3[%c0_6, %c0_7] : memref<8x128xf32, #tpu.memory_space<vmem>>, vector<8x128xf32>
      %cst = arith.constant 9.990000e-01 : f32
      %10 = vector.broadcast %cst : f32 to vector<8x128xf32>
      %11 = arith.mulf %8, %10 : vector<8x128xf32>
      %cst_8 = arith.constant 1.000000e-03 : f32
      %12 = vector.broadcast %cst_8 : f32 to vector<8x128xf32>
      %13 = arith.mulf %9, %12 : vector<8x128xf32>
      %14 = arith.addf %11, %13 : vector<8x128xf32>
      %c0_9 = arith.constant 0 : index
      %c0_10 = arith.constant 0 : index
      %15 = vector.load %arg4[%c0_9, %c0_10] : memref<8x128xf32, #tpu.memory_space<vmem>>, vector<8x128xf32>
      tpu.vector_store %arg4[%c0_9, %c0_10], %14 {strides = array<i32>} : memref<8x128xf32, #tpu.memory_space<vmem>>, vector<8x128xf32>,
    } else {
    }
    return
  }
  func.func @transform_0(%arg0: i32, %arg1: memref<1xi32, #tpu.memory_space<smem>>) -> (i32, i32) {
    %c0_i32 = arith.constant 0 : i32
    %c0_i32_0 = arith.constant 0 : i32
    return %arg0, %c0_i32 : i32, i32
  }
  func.func @transform_1(%arg0: i32, %arg1: memref<1xi32, #tpu.memory_space<smem>>) -> (i32, i32) {
    %c0_i32 = arith.constant 0 : i32
    %c0_i32_0 = arith.constant 0 : i32
    return %arg0, %c0_i32 : i32, i32
  }
  func.func @transform_2(%arg0: i32, %arg1: memref<1xi32, #tpu.memory_space<smem>>) -> (i32, i32) {
    %c0_i32 = arith.constant 0 : i32
    %c0_i32_0 = arith.constant 0 : i32
    return %arg0, %c0_i32 : i32, i32
  }
}

</mosaic_0001>

<bundles_post_ra>
// kernel: tpu_custom_call.1
= control target key start
LH: loop header
LB: loop body
LE: loop exit
PB: predicated region body
PF: predicated region fallthrough
CT: control target
= control target key end

     0   :  { %s144_s0 = inlined_call_operand.<no memory space> [shape: s32[1], index: 0, kind: input, shape index: {}]   ;;  %s145_s1 = inlined_call_operand.hbm [shape: f32[8,128], index: 1, kind: input, shape index: {}, may-alias: {1,3}]   ;;  %s146_s2 = inlined_call_operand.vmem [shape: f32[8,128], index: 2, kind: input, shape index: {}]   ;;  %s147_s3 = inlined_call_operand.hbm [shape: f32[8,128], index: 3, kind: output, shape index: {}, may-alias: {1,3}]  }
   0x1   :  { %8 = sst [smem:[#allocation3]] %s144_s0 }
   0x2   :  { %9 = vsyncpa [#allocation5], 0 }
   0x3   :  { %10 = vsyncpa [#allocation6], 0  ;;  %s107_s14 = smov [#allocation4]  }
   0x4   :  { %s17_s15 = sshll.u32 %s107_s14, 4  ;;  %s18_s15 = int_to_ptr.vmem [resolvable:$true] %s17_s15 }
   0x5   :  { %s71_s16 = scalar_lea.vmem %s18_s15, 128  ;;  %p76_p1 = scmp.lt.s32.totalorder %s18_s15, %s18_s15 }
   0x6   :  { %p72_p0 = scmp.ne.s32.totalorder %s18_s15, %s71_s16  ;;  %p77_p2 = scmp.lt.s32.totalorder %s71_s16, %s71_s16 }
   0x8   :  { %p78_p3 = por %p77_p2, %p76_p1 }
   0xa   :  { %p79_p4 = pnand %p78_p3, %p72_p0 }
   0xc   :  { %82 = shalt.err (!%p79_p4)
}
   0xd   :  { %20 = dma.hbm_to_vmem [thread:$0]  %s145_s1, 128, %s18_s15, [#allocation5]  }
   0xe   :  { %103 = dma.done.wait [#allocation5], 128  }
   0xf   :  { %104 = vsyncadd [#allocation5], 4294967168  ;;  %s26_s19 = sld [smem:[#allocation3]] }
  0x15   :  { %p59_p5 = scmp.ne.s32.totalorder %s26_s19, 0 }
  0x17   :  { %30 = sbr.rel (%p59_p5) target bundleno = 30 (0x1e), region = 17 }
  0x1c   :  { %v31_v0 = vld [vmem:[%s146_s2] sm:$0xff] }
  0x1d   :  { %32 = vst [vmem:[#allocation7] sm:$0xff] %v31_v0 }
  0x1e PF:  { %s33_s21 = sld [smem:[#allocation3]] }
  0x24   :  { %p60_p6 = scmp.eq.s32.totalorder %s33_s21, 0 }
  0x26   :  { %37 = sbr.rel (%p60_p6) target bundleno = 50 (0x32), region = 21 }
  0x2b   :  { %v38_v1 = vld [vmem:[#allocation4] sm:$0xff] }
  0x2c   :  { %v39_v2 = vld [vmem:[%s146_s2] sm:$0xff]  ;;  %v40_v3 = vmul.f32 0.999, %v38_v1 }
  0x2d   :  { %v41_v4 = vmul.f32 0.001, %v39_v2 }
  0x2f   :  { %v42_v5 = vadd.f32 %v41_v4, %v40_v3 }
  0x31   :  { %43 = vst [vmem:[#allocation7] sm:$0xff] %v42_v5 }
  0x32 PF:  { %s108_s1 = smov [#allocation7]  }
  0x33   :  { %s50_s24 = sshll.u32 %s108_s1, 4  ;;  %s51_s24 = int_to_ptr.vmem [resolvable:$true] %s50_s24 }
  0x34   :  { %s83_s25 = scalar_lea.vmem %s51_s24, 128  ;;  %p88_p8 = scmp.lt.s32.totalorder %s51_s24, %s51_s24 }
  0x35   :  { %p84_p7 = scmp.ne.s32.totalorder %s51_s24, %s83_s25  ;;  %p89_p9 = scmp.lt.s32.totalorder %s83_s25, %s83_s25 }
  0x37   :  { %p90_p10 = por %p89_p9, %p88_p8 }
  0x39   :  { %p91_p11 = pnand %p90_p10, %p84_p7 }
  0x3b   :  { %94 = shalt.err (!%p91_p11)
}
  0x3c   :  { %53 = dma.vmem_to_hbm [thread:$0]  %s51_s24, 128, %s147_s3, [#allocation6]  }
  0x3d   :  { %105 = dma.done.wait [#allocation6], 128  }
  0x3e   :  { %106 = vsyncadd [#allocation6], 4294967168 }
  0x3f   :  { %57 = vsyncpa [#allocation5], 1 }
  0x40   :  { %58 = vsyncpa [#allocation6], 1 }

</bundles_post_ra>
